<compile_context>
chip_gen: v7x
topology: tpu7x:2x2x1
jax: 0.10.0
libtpu: 0.0.40
codegen_flags: <defaults>
</compile_context>

<pallas_src>
import functools

import jax
import jax.numpy as jnp
from jax.experimental import pallas as pl
from jax.experimental.pallas import tpu as pltpu

LANE = 128      # lane width
SUB = 8         # f32 sublanes per vreg (accumulator granularity)
TM_MAX = 8192   # rows per grid step: 8192 x 128 f32 = 4 MiB / input / buffer
NCORES = 2      # leading "parallel" grid axis (v7x has 2 TCs; no-op on 1-TC)


def _round_up(n, m):
    return ((n + m - 1) // m) * m


def _sublane_pack(dtype):
    """Rows per native sublane tile: 8 for f32, 16 for bf16, 32 for int8/fp8."""
    return max(SUB, 32 // jnp.dtype(dtype).itemsize)


def _make_sq_diff_kernel(tm, rows, bpc, tail_possible):
    """Accumulate sum((x - t)^2) into a per-core resident (8,128) f32 block."""

    def _fold(sq):
        # Sublane-group fold into a single vreg shape: VPU adds only; the one
        # cross-lane reduction happens once, in the jitted epilogue.
        return sq.reshape(tm // SUB, SUB, LANE).sum(axis=0)

    def kernel(x_ref, t_ref, out_ref):
        c = pl.program_id(0)         # core / row-range split
        i = pl.program_id(1)         # row-block within this core's range
        g = c * bpc + i              # global row-block index

        @pl.when(i == 0)
        def _():
            out_ref[...] = jnp.zeros_like(out_ref)

        d = x_ref[...].astype(jnp.float32) - t_ref[...].astype(jnp.float32)
        sq = d * d

        if tail_possible:
            # Unmasked fast path for all full blocks; mask only the block(s)
            # whose row range extends past the true row count (this also
            # zeroes fully-redundant blocks on the second core).
            @pl.when((g + 1) * tm <= rows)
            def _():
                out_ref[...] += _fold(sq)

            @pl.when((g + 1) * tm > rows)
            def _():
                row = jax.lax.broadcasted_iota(jnp.int32, (tm, LANE), 0) + g * tm
                out_ref[...] += _fold(jnp.where(row < rows, sq, 0.0))
        else:
            out_ref[...] += _fold(sq)

    return kernel


def _sum_sq_diff_partials(x2d, t2d, *, tm_max=TM_MAX):
    """Pallas reduction over (rows,128) views -> (ncores*8, 128) f32 partials."""
    rows = x2d.shape[0]
    pack = max(_sublane_pack(x2d.dtype), _sublane_pack(t2d.dtype))
    tm_cap = max(pack, (tm_max // pack) * pack)
    tm = min(tm_cap, _round_up(rows, pack))
    nblocks = pl.cdiv(rows, tm)
    ncores = NCORES if nblocks >= NCORES else 1
    bpc = pl.cdiv(nblocks, ncores)            # row blocks per core
    redundant = ncores * bpc > nblocks        # second core may own extra steps
    tail_possible = redundant or (rows % tm != 0)

    def in_map(c, i):
        g = c * bpc + i
        if redundant:
            g = jnp.minimum(g, nblocks - 1)   # clamp; kernel masks these to 0
        return (g, 0)

    itemsizes = x2d.dtype.itemsize + t2d.dtype.itemsize
    buf_bytes = 2 * tm * LANE * itemsizes     # double-buffered input tiles
    vmem_limit = int(min(max(32 << 20, buf_bytes + (24 << 20)), 60 << 20))

    return pl.pallas_call(
        _make_sq_diff_kernel(tm, rows, bpc, tail_possible),
        out_shape=jax.ShapeDtypeStruct((ncores * SUB, LANE), jnp.float32),
        grid_spec=pltpu.PrefetchScalarGridSpec(
            num_scalar_prefetch=0,
            grid=(ncores, bpc),
            in_specs=[
                pl.BlockSpec((tm, LANE), in_map),
                pl.BlockSpec((tm, LANE), in_map),
            ],
            out_specs=pl.BlockSpec((SUB, LANE), lambda c, i: (c, 0)),
        ),
        compiler_params=pltpu.CompilerParams(
            dimension_semantics=("parallel", "arbitrary"),
            vmem_limit_bytes=vmem_limit,
        ),
        cost_estimate=pl.CostEstimate(
            flops=3 * x2d.size,
            transcendentals=0,
            bytes_accessed=x2d.size * x2d.dtype.itemsize
            + t2d.size * t2d.dtype.itemsize
            + ncores * SUB * LANE * 4,
        ),
    )(x2d, t2d)


def _as_lane_view(a):
    """Zero-copy (rows, 128) lane-dense view; pads only when numel % 128 != 0."""
    flat = jnp.ravel(a)
    pad = (-flat.size) % LANE
    if pad:
        # TODO(synk): replace this (rare) pad copy with an in-kernel lane mask
        # for element counts that are not a multiple of 128.
        flat = jnp.pad(flat, (0, pad))
    return flat.reshape(-1, LANE)


@functools.partial(jax.jit, static_argnames=("tm_max",))
def _content_loss_value(x, t2d, scale, *, tm_max=TM_MAX):
    """Fused: lane view + Pallas partial sums + cross-lane reduce + scaling."""
    partials = _sum_sq_diff_partials(_as_lane_view(x), t2d, tm_max=tm_max)
    return jnp.sum(partials) * scale


class ContentLoss:
    """JAX/Pallas port of the PyTorch ContentLoss module."""

    def __init__(self, target, alpha, tm_max=TM_MAX):
        # .detach() equivalent: stop gradients through the target.
        self.target = jax.lax.stop_gradient(target)
        self.alpha = alpha
        self._tm_max = int(tm_max)
        # Hoisted target preprocessing: runs once, not per forward call.
        self._t2d = _as_lane_view(self.target)
        # alpha * mean(.) == (alpha / numel) * sum(.)
        self._scale = jnp.float32(alpha / self.target.size)
        self.loss = None

    def __call__(self, x):
        assert x.shape == self.target.shape, "input/target shape mismatch"
        # NOTE: self.loss is a stateful side effect (matches the PyTorch
        # module); keep this call outside jax.jit so it stays concrete.
        self.loss = _content_loss_value(
            x, self._t2d, self._scale, tm_max=self._tm_max
        )
        # Forward returns the input unchanged (identity pass-through).
        return x


if __name__ == "__main__":
    key = jax.random.PRNGKey(0)
    k1, k2, k3, k4 = jax.random.split(key, 4)

    # --- Primary small test: 2x4x16x16 f32 (single block) ----------------
    N, C, H, W = 2, 4, 16, 16
    x = jax.random.normal(k1, (N, C, H, W), dtype=jnp.float32)
    target = jax.random.normal(k2, (N, C, H, W), dtype=jnp.float32)
    alpha = 0.75

    module = ContentLoss(target, alpha)
    out = jax.block_until_ready(module(x))
    loss = jax.block_until_ready(module.loss)

    ref = alpha * jnp.mean((x - target) ** 2)
    assert jnp.allclose(loss, ref, rtol=1e-5, atol=1e-6), (loss, ref)
    assert jnp.array_equal(out, x)

    # --- Multi-block + dual-"core" grid path (small tm_max override) -----
    module_mb = ContentLoss(target, alpha, tm_max=8)
    jax.block_until_ready(module_mb(x))
    assert jnp.allclose(module_mb.loss, ref, rtol=1e-5, atol=1e-6), module_mb.loss

    # --- Non-divisible row count: 5760 elems = 45 rows of 128 ------------
    #     (partial trailing block + redundant clamped block on core 1)
    xs = jax.random.normal(k3, (3, 5, 24, 16), dtype=jnp.float32)
    ts = jax.random.normal(k4, (3, 5, 24, 16), dtype=jnp.float32)
    module_odd = ContentLoss(ts, 0.5, tm_max=16)
    jax.block_until_ready(module_odd(xs))
    ref_odd = 0.5 * jnp.mean((xs - ts) ** 2)
    assert jnp.allclose(module_odd.loss, ref_odd, rtol=1e-5, atol=1e-6), (
        module_odd.loss, ref_odd)

    # --- bf16 inputs (dtype-aware sublane packing, no f32 upcast in HBM) -
    xb = x.astype(jnp.bfloat16)
    tb = target.astype(jnp.bfloat16)
    module_bf = ContentLoss(tb, alpha)
    jax.block_until_ready(module_bf(xb))
    ref_bf = alpha * jnp.mean(
        (xb.astype(jnp.float32) - tb.astype(jnp.float32)) ** 2)
    assert jnp.allclose(module_bf.loss, ref_bf, rtol=1e-3, atol=1e-4), (
        module_bf.loss, ref_bf)

    print("KERNEL_OK")
</pallas_src>

<mosaic_0001>
module attributes {stable_mosaic.version = 11 : i64} {
  func.func @kernel(%arg0: i32, %arg1: i32, %arg2: memref<16x128xf32, #tpu.memory_space<vmem>>, %arg3: memref<16x128xf32, #tpu.memory_space<vmem>>, %arg4: memref<8x128xf32, #tpu.memory_space<vmem>>) attributes {dimension_semantics = [#tpu.dimension_semantics<parallel>, #tpu.dimension_semantics<arbitrary>], iteration_bounds = array<i64: 1, 1>, scalar_prefetch = 0 : i64, scratch_operands = 0 : i64, tpu.core_type = #tpu.core_type<tc>, window_params = [{transform_indices = @transform_0, window_bounds = array<i64: 16, 128>}, {transform_indices = @transform_1, window_bounds = array<i64: 16, 128>}, {transform_indices = @transform_2, window_bounds = array<i64: 8, 128>}]} {
    %c0_i32 = arith.constant 0 : i32
    %0 = arith.cmpi eq, %arg1, %c0_i32 : i32
    %1 = arith.extui %0 : i1 to i32
    %c0_i32_0 = arith.constant 0 : i32
    %2 = arith.cmpi ne, %1, %c0_i32_0 : i32
    scf.if %2 {
      %cst_8 = arith.constant 0.000000e+00 : f32
      %12 = vector.broadcast %cst_8 : f32 to vector<8x128xf32>
      %c0_9 = arith.constant 0 : index
      %c0_10 = arith.constant 0 : index
      %13 = vector.load %arg4[%c0_9, %c0_10] : memref<8x128xf32, #tpu.memory_space<vmem>>, vector<8x128xf32>
      tpu.vector_store %arg4[%c0_9, %c0_10], %12 {strides = array<i32>} : memref<8x128xf32, #tpu.memory_space<vmem>>, vector<8x128xf32>,
    } else {
    }
    %c0 = arith.constant 0 : index
    %c0_1 = arith.constant 0 : index
    %3 = vector.load %arg2[%c0, %c0_1] : memref<16x128xf32, #tpu.memory_space<vmem>>, vector<16x128xf32>
    %c0_2 = arith.constant 0 : index
    %c0_3 = arith.constant 0 : index
    %4 = vector.load %arg3[%c0_2, %c0_3] : memref<16x128xf32, #tpu.memory_space<vmem>>, vector<16x128xf32>
    %5 = arith.subf %3, %4 : vector<16x128xf32>
    %6 = arith.mulf %5, %5 : vector<16x128xf32>
    %c0_4 = arith.constant 0 : index
    %c0_5 = arith.constant 0 : index
    %7 = vector.load %arg4[%c0_4, %c0_5] : memref<8x128xf32, #tpu.memory_space<vmem>>, vector<8x128xf32>
    %8 = vector.shape_cast %6 : vector<16x128xf32> to vector<2x8x128xf32>
    %cst = arith.constant dense<0.000000e+00> : vector<8x128xf32>
    %9 = vector.multi_reduction <add>, %8, %cst [0] : vector<2x8x128xf32> to vector<8x128xf32>
    %10 = arith.addf %7, %9 : vector<8x128xf32>
    %c0_6 = arith.constant 0 : index
    %c0_7 = arith.constant 0 : index
    %11 = vector.load %arg4[%c0_6, %c0_7] : memref<8x128xf32, #tpu.memory_space<vmem>>, vector<8x128xf32>
    tpu.vector_store %arg4[%c0_6, %c0_7], %10 {strides = array<i32>} : memref<8x128xf32, #tpu.memory_space<vmem>>, vector<8x128xf32>,
    return
  }
  func.func @transform_0(%arg0: i32, %arg1: i32) -> (i32, i32) {
    %c1_i32 = arith.constant 1 : i32
    %0 = arith.muli %arg0, %c1_i32 : i32
    %1 = arith.addi %0, %arg1 : i32
    %c0_i32 = arith.constant 0 : i32
    %c0_i32_0 = arith.constant 0 : i32
    return %1, %c0_i32 : i32, i32
  }
  func.func @transform_1(%arg0: i32, %arg1: i32) -> (i32, i32) {
    %c1_i32 = arith.constant 1 : i32
    %0 = arith.muli %arg0, %c1_i32 : i32
    %1 = arith.addi %0, %arg1 : i32
    %c0_i32 = arith.constant 0 : i32
    %c0_i32_0 = arith.constant 0 : i32
    return %1, %c0_i32 : i32, i32
  }
  func.func @transform_2(%arg0: i32, %arg1: i32) -> (i32, i32) {
    %c0_i32 = arith.constant 0 : i32
    %c0_i32_0 = arith.constant 0 : i32
    return %arg0, %c0_i32 : i32, i32
  }
}

</mosaic_0001>

<bundles_post_ra>
// kernel: _content_loss_value.1
= control target key start
LH: loop header
LB: loop body
LE: loop exit
PB: predicated region body
PF: predicated region fallthrough
CT: control target
= control target key end

     0   :  { %s119_s0 = inlined_call_operand.vmem [shape: f32[16,128], index: 0, kind: input, shape index: {}]   ;;  %s120_s1 = inlined_call_operand.vmem [shape: f32[16,128], index: 1, kind: input, shape index: {}]   ;;  %s121_s2 = inlined_call_operand.vmem [shape: f32[8,128], index: 2, kind: output, shape index: {}]  }
   0x1   :  { %v60_v0 = vld [vmem:[%s119_s0] sm:$0xff]  ;;  %v61_v1 = vld [vmem:[%s119_s0 + $0x8] sm:$0xff] }
   0x2   :  { %v62_v2 = vld [vmem:[%s120_s1] sm:$0xff]  ;;  %v63_v3 = vld [vmem:[%s120_s1 + $0x8] sm:$0xff] }
   0x3   :  { %v64_v4 = vsub.f32 %v60_v0, %v62_v2  ;;  %v65_v5 = vsub.f32 %v61_v1, %v63_v3 }
   0x5   :  { %v66_v6 = vmul.f32 %v64_v4, %v64_v4  ;;  %v67_v7 = vmul.f32 %v65_v5, %v65_v5 }
   0x7   :  { %v69_v8 = vadd.f32 %v67_v7, %v66_v6 }
   0x9   :  { %71 = vst [vmem:[%s121_s2] sm:$0xff] %v69_v8 }

</bundles_post_ra>
